<compile_context>
chip_gen: v5e
topology: v5e:2x2
jax: 0.10.0
libtpu: 0.0.40
codegen_flags: <defaults>
</compile_context>

<pallas_src>
import functools
import numpy as np
import jax
import jax.numpy as jnp
from jax.experimental import pallas as pl
from jax.experimental.pallas import tpu as pltpu


def _round8(x):
    return ((x + 7) // 8) * 8


# -----------------------------------------------------------------------------
# Fused kernel (one grid step == one graph):
#   normalized 3-layer GCN stack (input_mlp folded into layer 0)
#   -> fused start/tail first-layer matmul -> start head -> Gumbel-max start sample
#   -> selected-row gather (masked sublane reduce) -> tail head -> masked Gumbel-max tail sample
# -----------------------------------------------------------------------------
def _policy_kernel(dims, ctrl_ref, adj_ref, fp_ref, w_ref, b_ref, logits_ref, act_ref):
    (N, F_IN, FP, L0, L1, L2, HS, HT, DENSE, OFF0, OFF1, OFF2, OFF3) = dims
    b = pl.program_id(0)

    adj = adj_ref[...]                      # [N, N]  raw adjacency
    fp = fp_ref[...]                        # [N, FP] = [feat | ones | deg | gumbel0 | gumbel1 | 0pad]

    deg = fp[:, F_IN + 1:F_IN + 2]          # [N, 1] column-degree (torch normalize_adj convention)
    gum = fp[:, F_IN + 2:F_IN + 4]          # [N, 2] Gumbel noise (start, tail)
    # D^-1/2 with zero-degree factor -> 0 (matches NaN->0 in normalize_adj)
    inv = jnp.where(deg > 0.0, jax.lax.rsqrt(deg), 0.0)

    # --- GCN layer 0 with input_mlp folded in:
    #     relu( (A @ [feat | 1]) @ [[W_in@W_g0],[b_in@W_g0]] + b_g0 ),
    #     A @ M computed as inv * (adj @ (inv * M)); extra packed columns hit zero weight rows.
    ax = inv * jnp.dot(adj, inv * fp, preferred_element_type=jnp.float32)
    x = jnp.maximum(
        jnp.dot(ax, w_ref[OFF0:OFF0 + FP, 0:L0], preferred_element_type=jnp.float32)
        + b_ref[0:1, 0:L0], 0.0)

    # --- GCN layer 1 ---
    ax = inv * jnp.dot(adj, inv * x, preferred_element_type=jnp.float32)
    x = jnp.maximum(
        jnp.dot(ax, w_ref[OFF1:OFF1 + L0, 0:L1], preferred_element_type=jnp.float32)
        + b_ref[1:2, 0:L1], 0.0)

    # --- GCN layer 2 ---
    ax = inv * jnp.dot(adj, inv * x, preferred_element_type=jnp.float32)
    x = jnp.maximum(
        jnp.dot(ax, w_ref[OFF2:OFF2 + L1, 0:L2], preferred_element_type=jnp.float32)
        + b_ref[2:3, 0:L2], 0.0)
    # x == cur_out, [N, DENSE]
    # graph_embedding = mean(cur_out, 0) is computed but unused in the torch forward; skipped.

    # --- fused first layer of start/tail heads: [s | t_a(+b_t1) | t_b] in one MXU pass ---
    cat = (jnp.dot(x, w_ref[OFF3:OFF3 + DENSE, 0:HS + 2 * HT],
                   preferred_element_type=jnp.float32)
           + b_ref[3:4, 0:HS + 2 * HT])                       # [N, HS+2*HT]

    b_s2 = b_ref[6:7, 0:1]                                    # [1,1] scalar biases of the 1-wide heads
    b_t2 = b_ref[6:7, 1:2]

    s = jnp.clip(cat[:, 0:HS], 0.0, 6.0)                      # ReLU6
    start_logits = jnp.sum(s * b_ref[4:5, 0:HS], axis=-1, keepdims=True) + b_s2   # [N, 1]

    node_id = jax.lax.broadcasted_iota(jnp.int32, (N, 1), 0)
    neg_big = jnp.float32(-1e30)
    ob_len = ctrl_ref[b, 0]
    ob_first = ctrl_ref[b, 1]

    # start_action ~ Categorical(softmax(start_logits[0:ob_len_first]))  (Gumbel-max)
    start_scores = jnp.where(node_id < ob_first, start_logits + gum[:, 0:1], neg_big)
    m0 = jnp.max(start_scores)
    start_action = jnp.min(jnp.where(start_scores == m0, node_id, N))

    # --- tail MLP on cat([cur_out, cur_out[start_action]]) as a split matmul ---
    sel_mask = node_id == start_action
    t_b = cat[:, HS + HT:HS + 2 * HT]                          # X @ w_t1b (no bias)
    sel_b = jnp.sum(jnp.where(sel_mask, t_b, 0.0), axis=0, keepdims=True)    # [1, HT] row gather
    t = jnp.clip(cat[:, HS:HS + HT] + sel_b, 0.0, 6.0)         # t_a slice already carries b_t1
    tail_logits = jnp.sum(t * b_ref[5:6, 0:HT], axis=-1, keepdims=True) + b_t2      # [N, 1]

    # tail_action ~ Categorical over positions < ob_len, excluding start_action
    # (torch masks with -1e6 before softmax; exact exclusion is numerically equivalent)
    tail_scores = jnp.where((node_id < ob_len) & jnp.logical_not(sel_mask),
                            tail_logits + gum[:, 1:2], neg_big)
    m1 = jnp.max(tail_scores)
    tail_action = jnp.min(jnp.where(tail_scores == m1, node_id, N))

    # --- merged outputs: one [N,2] logits block, one [1,2] int32 action block ---
    logits_ref[...] = jnp.concatenate([start_logits, tail_logits], axis=-1)
    act_ref[...] = jnp.concatenate(
        [jnp.reshape(start_action, (1, 1)), jnp.reshape(tail_action, (1, 1))],
        axis=-1).astype(jnp.int32)
    # TODO(synk): random_policy=True branch (uniform random logits) not implemented; only the
    #             default random_policy=False path is translated.


# -----------------------------------------------------------------------------
# Parameter init (glorot-uniform weights / zero biases, mirroring the torch module)
# -----------------------------------------------------------------------------
def glorot(key, in_dim, out_dim):
    limit = float(np.sqrt(6.0 / (in_dim + out_dim)))
    return jax.random.uniform(key, (in_dim, out_dim), jnp.float32, -limit, limit)


def init_params(key, input_dim, initial_dim, latent_dim, start_hidden, tail_hidden):
    keys = jax.random.split(key, 8)
    dense = latent_dim[-1]
    w_t1 = glorot(keys[6], 2 * dense, tail_hidden)
    return {
        "w_in": glorot(keys[0], input_dim, initial_dim),
        "b_in": jnp.zeros((1, initial_dim), jnp.float32),
        "w_g0": glorot(keys[1], initial_dim, latent_dim[0]),
        "b_g0": jnp.zeros((1, latent_dim[0]), jnp.float32),
        "w_g1": glorot(keys[2], latent_dim[0], latent_dim[1]),
        "b_g1": jnp.zeros((1, latent_dim[1]), jnp.float32),
        "w_g2": glorot(keys[3], latent_dim[1], latent_dim[2]),
        "b_g2": jnp.zeros((1, latent_dim[2]), jnp.float32),
        "w_s1": glorot(keys[4], dense, start_hidden),
        "b_s1": jnp.zeros((1, start_hidden), jnp.float32),
        "w_s2_row": glorot(keys[5], start_hidden, 1).T,        # [1, HS] (lane-reduction head)
        "b_s2": jnp.zeros((), jnp.float32),
        "w_t1a": w_t1[:dense],                                 # tail_mlp1 pre-split
        "w_t1b": w_t1[dense:],
        "b_t1": jnp.zeros((1, tail_hidden), jnp.float32),
        "w_t2_row": glorot(keys[7], tail_hidden, 1).T,         # [1, HT]
        "b_t2": jnp.zeros((), jnp.float32),
        # full_mlp1/full_mlp2 exist in __init__ but are unused in forward(); omitted.
    }


# -----------------------------------------------------------------------------
# Wrapper: batched PolicyNN.forward(node_feat, n2n_sp, node_num)
#   node_feat [B,N,F] (or [N,F]), n2n_sp [B,N,N] (or [N,N]), node_num [B] (or scalar)
# -----------------------------------------------------------------------------
def policy_nn_forward(params, node_feat, n2n_sp, node_num, node_type_num, rng_key):
    single = node_feat.ndim == 2
    if single:
        node_feat, n2n_sp = node_feat[None], n2n_sp[None]

    node_feat = node_feat.astype(jnp.float32)
    adj = n2n_sp.astype(jnp.float32)
    B, N, F_IN = node_feat.shape

    node_num = jnp.broadcast_to(jnp.asarray(node_num, jnp.int32).reshape(-1), (B,))
    ob_first = node_num - jnp.asarray(node_type_num, jnp.int32)
    ctrl = jnp.stack([node_num, ob_first], axis=-1)            # int32 [B, 2] -> SMEM prefetch

    # Column-degree (torch normalize_adj uses np.sum(adj, 0)); packed as a feature column.
    deg = jnp.sum(adj, axis=1)                                 # [B, N]
    # Gumbel noise for in-kernel categorical sampling (jax.random: portable, deterministic).
    gum = jax.random.gumbel(rng_key, (B, N, 2), jnp.float32)

    # Packed per-graph feature slab: [feat | ones | deg | gumbel0 | gumbel1 | zero pad]
    FP = _round8(F_IN + 4)
    fp = jnp.concatenate(
        [node_feat, jnp.ones((B, N, 1), jnp.float32), deg[..., None], gum], axis=-1)
    if FP > F_IN + 4:
        fp = jnp.pad(fp, ((0, 0), (0, 0), (0, FP - (F_IN + 4))))

    L0 = params["w_g0"].shape[1]
    L1 = params["w_g1"].shape[1]
    L2 = params["w_g2"].shape[1]
    HS = params["w_s1"].shape[1]
    HT = params["w_t1a"].shape[1]
    DENSE = L2
    C = max(L0, L1, L2, HS + 2 * HT)

    # Fold input_mlp into GCN layer 0 (constants, computed once outside the kernel).
    w0 = jnp.dot(params["w_in"], params["w_g0"])               # [F_IN, L0]
    b_in0 = jnp.dot(params["b_in"], params["w_g0"])            # [1, L0]
    # Fused start/tail first-layer weight.
    w_cat = jnp.concatenate([params["w_s1"], params["w_t1a"], params["w_t1b"]], axis=1)

    # One contiguous weight slab (8-aligned row sections -> aligned static slices in-kernel).
    OFF0 = 0
    OFF1 = OFF0 + FP
    OFF2 = OFF1 + _round8(L0)
    OFF3 = OFF2 + _round8(L1)
    ROWS = OFF3 + _round8(DENSE)
    wslab = jnp.zeros((ROWS, C), jnp.float32)
    wslab = wslab.at[OFF0:OFF0 + F_IN, :L0].set(w0)
    wslab = wslab.at[OFF0 + F_IN:OFF0 + F_IN + 1, :L0].set(b_in0)  # ones-column row (folded bias)
    wslab = wslab.at[OFF1:OFF1 + L0, :L1].set(params["w_g1"])
    wslab = wslab.at[OFF2:OFF2 + L1, :L2].set(params["w_g2"])
    wslab = wslab.at[OFF3:OFF3 + DENSE, :HS + 2 * HT].set(w_cat)

    # One bias/head slab.
    bslab = jnp.zeros((8, C), jnp.float32)
    bslab = bslab.at[0, :L0].set(params["b_g0"][0])
    bslab = bslab.at[1, :L1].set(params["b_g1"][0])
    bslab = bslab.at[2, :L2].set(params["b_g2"][0])
    bslab = bslab.at[3, :HS].set(params["b_s1"][0])            # b_cat = [b_s1 | b_t1 | 0]
    bslab = bslab.at[3, HS:HS + HT].set(params["b_t1"][0])
    bslab = bslab.at[4, :HS].set(params["w_s2_row"][0])        # width-1 head rows
    bslab = bslab.at[5, :HT].set(params["w_t2_row"][0])
    bslab = bslab.at[6, 0].set(params["b_s2"])
    bslab = bslab.at[6, 1].set(params["b_t2"])

    dims = (N, F_IN, FP, L0, L1, L2, HS, HT, DENSE, OFF0, OFF1, OFF2, OFF3)
    kernel = functools.partial(_policy_kernel, dims)

    grid_spec = pltpu.PrefetchScalarGridSpec(
        num_scalar_prefetch=1,                                 # ctrl -> SMEM
        grid=(B,),
        in_specs=[
            pl.BlockSpec((None, N, N), lambda b, ctrl: (b, 0, 0)),    # adjacency  (per graph)
            pl.BlockSpec((None, N, FP), lambda b, ctrl: (b, 0, 0)),   # feature slab (per graph)
            pl.BlockSpec((ROWS, C), lambda b, ctrl: (0, 0)),          # weight slab (shared)
            pl.BlockSpec((8, C), lambda b, ctrl: (0, 0)),             # bias slab   (shared)
        ],
        out_specs=(
            pl.BlockSpec((None, N, 2), lambda b, ctrl: (b, 0, 0)),    # [start|tail] logits
            pl.BlockSpec((None, 1, 2), lambda b, ctrl: (b, 0, 0)),    # [start, tail] actions
        ),
    )

    flops = 2 * B * N * (3 * N * max(FP, L0, L1) + FP * L0 + L0 * L1 + L1 * L2
                         + L2 * (HS + 2 * HT) + HS + 2 * HT) + 8 * B * N * N
    bytes_accessed = 4 * (adj.size + fp.size + wslab.size + bslab.size + ctrl.size
                          + B * N * 2 + B * 2)

    logits, actions = pl.pallas_call(
        kernel,
        grid_spec=grid_spec,
        out_shape=(jax.ShapeDtypeStruct((B, N, 2), jnp.float32),
                   jax.ShapeDtypeStruct((B, 1, 2), jnp.int32)),
        compiler_params=pltpu.CompilerParams(
            dimension_semantics=("parallel",),                 # graphs across v7x's 2 TCs
            vmem_limit_bytes=16 * 1024 * 1024),
        cost_estimate=pl.CostEstimate(flops=int(flops),
                                      transcendentals=int(B * N),
                                      bytes_accessed=int(bytes_accessed)),
    )(ctrl, adj, fp, wslab, bslab)

    start_action = actions[:, 0, 0]
    tail_action = actions[:, 0, 1]
    start_logits = logits[..., 0]
    tail_logits = logits[..., 1]
    if single:
        return start_action[0], start_logits[0], tail_action[0], tail_logits[0]
    return start_action, start_logits, tail_action, tail_logits


# -----------------------------------------------------------------------------
if __name__ == "__main__":
    B, N = 2, 16               # two graphs per call (demonstrates the parallel grid axis)
    INPUT_DIM = 8
    INITIAL_DIM = 8
    LATENT_DIM = [16, 24, 32]
    START_HIDDEN = 16
    TAIL_HIDDEN = 24
    NODE_TYPE_NUM = 3

    root = jax.random.PRNGKey(0)
    k_param, k_feat, k_adj, k_sample = jax.random.split(root, 4)

    params = init_params(k_param, INPUT_DIM, INITIAL_DIM, LATENT_DIM,
                         START_HIDDEN, TAIL_HIDDEN)

    node_feat = jax.random.normal(k_feat, (B, N, INPUT_DIM), jnp.float32)

    # Symmetric 0/1 adjacency with self-loops (so degrees are nonzero).
    upper = (jax.random.uniform(k_adj, (B, N, N)) > 0.7).astype(jnp.float32)
    adj = jnp.clip(upper + jnp.swapaxes(upper, -1, -2) + jnp.eye(N, dtype=jnp.float32)[None],
                   0.0, 1.0)

    node_num = jnp.array([10, 13], jnp.int32)   # per-graph valid-node counts

    fwd = jax.jit(policy_nn_forward)
    start_action, start_logits_ori, tail_action, tail_logits_ori = fwd(
        params, node_feat, adj, node_num, NODE_TYPE_NUM, k_sample)

    jax.block_until_ready((start_action, start_logits_ori, tail_action, tail_logits_ori))
    print("KERNEL_OK")
</pallas_src>

<mosaic_0001>
module attributes {stable_mosaic.version = 11 : i64} {
  func.func @_policy_kernel(%arg0: i32, %arg1: memref<2x2xi32, #tpu.memory_space<smem>>, %arg2: memref<1x16x16xf32, #tpu.memory_space<vmem>>, %arg3: memref<1x16x16xf32, #tpu.memory_space<vmem>>, %arg4: memref<88x64xf32, #tpu.memory_space<vmem>>, %arg5: memref<8x64xf32, #tpu.memory_space<vmem>>, %arg6: memref<1x16x2xf32, #tpu.memory_space<vmem>>, %arg7: memref<1x1x2xi32, #tpu.memory_space<vmem>>) attributes {dimension_semantics = [#tpu.dimension_semantics<parallel>], iteration_bounds = array<i64: 2>, scalar_prefetch = 1 : i64, scratch_operands = 0 : i64, tpu.core_type = #tpu.core_type<tc>, window_params = [{transform_indices = @transform_0, window_bounds = array<i64: 1, 16, 16>}, {transform_indices = @transform_1, window_bounds = array<i64: 1, 16, 16>}, {pipeline_mode = #tpu.pipeline_mode<synchronous>, transform_indices = @transform_2, window_bounds = array<i64: 88, 64>}, {pipeline_mode = #tpu.pipeline_mode<synchronous>, transform_indices = @transform_3, window_bounds = array<i64: 8, 64>}, {transform_indices = @transform_4, window_bounds = array<i64: 1, 16, 2>}, {transform_indices = @transform_5, window_bounds = array<i64: 1, 1, 2>}]} {
    %c0 = arith.constant 0 : index
    %c0_0 = arith.constant 0 : index
    %c0_1 = arith.constant 0 : index
    %0 = vector.load %arg2[%c0, %c0_0, %c0_1] : memref<1x16x16xf32, #tpu.memory_space<vmem>>, vector<1x16x16xf32>
    %1 = vector.shape_cast %0 : vector<1x16x16xf32> to vector<16x16xf32>
    %c0_2 = arith.constant 0 : index
    %c0_3 = arith.constant 0 : index
    %c0_4 = arith.constant 0 : index
    %2 = vector.load %arg3[%c0_2, %c0_3, %c0_4] : memref<1x16x16xf32, #tpu.memory_space<vmem>>, vector<1x16x16xf32>
    %3 = vector.shape_cast %2 : vector<1x16x16xf32> to vector<16x16xf32>
    %4 = vector.extract_strided_slice %3 {offsets = [0, 9], sizes = [16, 1], strides = [1, 1]} : vector<16x16xf32> to vector<16x1xf32>
    %5 = vector.extract_strided_slice %3 {offsets = [0, 10], sizes = [16, 2], strides = [1, 1]} : vector<16x16xf32> to vector<16x2xf32>
    %cst = arith.constant 0.000000e+00 : f32
    %6 = vector.broadcast %cst : f32 to vector<16x1xf32>
    %7 = arith.cmpf ogt, %4, %6 : vector<16x1xf32>
    %8 = math.rsqrt %4 : vector<16x1xf32>
    %cst_5 = arith.constant 0.000000e+00 : f32
    %9 = vector.broadcast %cst_5 : f32 to vector<16x1xf32>
    %10 = arith.select %7, %8, %9 : vector<16x1xi1>, vector<16x1xf32>
    %11 = vector.broadcast %10 : vector<16x1xf32> to vector<16x16xf32>
    %12 = arith.mulf %11, %3 : vector<16x16xf32>
    %cst_6 = arith.constant dense<0.000000e+00> : vector<16x16xf32>
    %13 = tpu.matmul %1, %12, %cst_6 {dimension_numbers = #tpu.dot_dimension_numbers<[1], [0], [0], [1], [0, 0, 1, 1], [], []>} : vector<16x16xf32>, vector<16x16xf32>, vector<16x16xf32> -> vector<16x16xf32>
    %14 = vector.broadcast %10 : vector<16x1xf32> to vector<16x16xf32>
    %15 = arith.mulf %14, %13 : vector<16x16xf32>
    %c0_7 = arith.constant 0 : index
    %c0_8 = arith.constant 0 : index
    %16 = vector.load %arg4[%c0_7, %c0_8] : memref<88x64xf32, #tpu.memory_space<vmem>>, vector<16x16xf32>
    %cst_9 = arith.constant dense<0.000000e+00> : vector<16x16xf32>
    %17 = tpu.matmul %15, %16, %cst_9 {dimension_numbers = #tpu.dot_dimension_numbers<[1], [0], [0], [1], [0, 0, 1, 1], [], []>} : vector<16x16xf32>, vector<16x16xf32>, vector<16x16xf32> -> vector<16x16xf32>
    %c0_10 = arith.constant 0 : index
    %c0_11 = arith.constant 0 : index
    %18 = vector.load %arg5[%c0_10, %c0_11] : memref<8x64xf32, #tpu.memory_space<vmem>>, vector<1x16xf32>
    %19 = vector.broadcast %18 : vector<1x16xf32> to vector<16x16xf32>
    %20 = arith.addf %17, %19 : vector<16x16xf32>
    %cst_12 = arith.constant 0.000000e+00 : f32
    %21 = vector.broadcast %cst_12 : f32 to vector<16x16xf32>
    %22 = arith.maximumf %20, %21 : vector<16x16xf32>
    %23 = vector.broadcast %10 : vector<16x1xf32> to vector<16x16xf32>
    %24 = arith.mulf %23, %22 : vector<16x16xf32>
    %cst_13 = arith.constant dense<0.000000e+00> : vector<16x16xf32>
    %25 = tpu.matmul %1, %24, %cst_13 {dimension_numbers = #tpu.dot_dimension_numbers<[1], [0], [0], [1], [0, 0, 1, 1], [], []>} : vector<16x16xf32>, vector<16x16xf32>, vector<16x16xf32> -> vector<16x16xf32>
    %26 = vector.broadcast %10 : vector<16x1xf32> to vector<16x16xf32>
    %27 = arith.mulf %26, %25 : vector<16x16xf32>
    %c16 = arith.constant 16 : index
    %c0_14 = arith.constant 0 : index
    %28 = vector.load %arg4[%c16, %c0_14] : memref<88x64xf32, #tpu.memory_space<vmem>>, vector<16x24xf32>
    %cst_15 = arith.constant dense<0.000000e+00> : vector<16x24xf32>
    %29 = tpu.matmul %27, %28, %cst_15 {dimension_numbers = #tpu.dot_dimension_numbers<[1], [0], [0], [1], [0, 0, 1, 1], [], []>} : vector<16x16xf32>, vector<16x24xf32>, vector<16x24xf32> -> vector<16x24xf32>
    %c1 = arith.constant 1 : index
    %c0_16 = arith.constant 0 : index
    %30 = vector.load %arg5[%c1, %c0_16] : memref<8x64xf32, #tpu.memory_space<vmem>>, vector<1x24xf32>
    %31 = vector.broadcast %30 : vector<1x24xf32> to vector<16x24xf32>
    %32 = arith.addf %29, %31 : vector<16x24xf32>
    %cst_17 = arith.constant 0.000000e+00 : f32
    %33 = vector.broadcast %cst_17 : f32 to vector<16x24xf32>
    %34 = arith.maximumf %32, %33 : vector<16x24xf32>
    %35 = vector.broadcast %10 : vector<16x1xf32> to vector<16x24xf32>
    %36 = arith.mulf %35, %34 : vector<16x24xf32>
    %cst_18 = arith.constant dense<0.000000e+00> : vector<16x24xf32>
    %37 = tpu.matmul %1, %36, %cst_18 {dimension_numbers = #tpu.dot_dimension_numbers<[1], [0], [0], [1], [0, 0, 1, 1], [], []>} : vector<16x16xf32>, vector<16x24xf32>, vector<16x24xf32> -> vector<16x24xf32>
    %38 = vector.broadcast %10 : vector<16x1xf32> to vector<16x24xf32>
    %39 = arith.mulf %38, %37 : vector<16x24xf32>
    %c32 = arith.constant 32 : index
    %c0_19 = arith.constant 0 : index
    %40 = vector.load %arg4[%c32, %c0_19] : memref<88x64xf32, #tpu.memory_space<vmem>>, vector<24x32xf32>
    %cst_20 = arith.constant dense<0.000000e+00> : vector<16x32xf32>
    %41 = tpu.matmul %39, %40, %cst_20 {dimension_numbers = #tpu.dot_dimension_numbers<[1], [0], [0], [1], [0, 0, 1, 1], [], []>} : vector<16x24xf32>, vector<24x32xf32>, vector<16x32xf32> -> vector<16x32xf32>
    %c2 = arith.constant 2 : index
    %c0_21 = arith.constant 0 : index
    %42 = vector.load %arg5[%c2, %c0_21] : memref<8x64xf32, #tpu.memory_space<vmem>>, vector<1x32xf32>
    %43 = vector.broadcast %42 : vector<1x32xf32> to vector<16x32xf32>
    %44 = arith.addf %41, %43 : vector<16x32xf32>
    %cst_22 = arith.constant 0.000000e+00 : f32
    %45 = vector.broadcast %cst_22 : f32 to vector<16x32xf32>
    %46 = arith.maximumf %44, %45 : vector<16x32xf32>
    %c56 = arith.constant 56 : index
    %c0_23 = arith.constant 0 : index
    %47 = vector.load %arg4[%c56, %c0_23] : memref<88x64xf32, #tpu.memory_space<vmem>>, vector<32x64xf32>
    %cst_24 = arith.constant dense<0.000000e+00> : vector<16x64xf32>
    %48 = tpu.matmul %46, %47, %cst_24 {dimension_numbers = #tpu.dot_dimension_numbers<[1], [0], [0], [1], [0, 0, 1, 1], [], []>} : vector<16x32xf32>, vector<32x64xf32>, vector<16x64xf32> -> vector<16x64xf32>
    %c3 = arith.constant 3 : index
    %c0_25 = arith.constant 0 : index
    %49 = vector.load %arg5[%c3, %c0_25] : memref<8x64xf32, #tpu.memory_space<vmem>>, vector<1x64xf32>
    %50 = vector.broadcast %49 : vector<1x64xf32> to vector<16x64xf32>
    %51 = arith.addf %48, %50 : vector<16x64xf32>
    %c6 = arith.constant 6 : index
    %c0_26 = arith.constant 0 : index
    %52 = vector.load %arg5[%c6, %c0_26] : memref<8x64xf32, #tpu.memory_space<vmem>>, vector<1x1xf32>
    %c6_27 = arith.constant 6 : index
    %c1_28 = arith.constant 1 : index
    %53 = vector.load %arg5[%c6_27, %c1_28] : memref<8x64xf32, #tpu.memory_space<vmem>>, vector<1x1xf32>
    %54 = vector.extract_strided_slice %51 {offsets = [0, 0], sizes = [16, 16], strides = [1, 1]} : vector<16x64xf32> to vector<16x16xf32>
    %cst_29 = arith.constant 0.000000e+00 : f32
    %cst_30 = arith.constant 6.000000e+00 : f32
    %55 = vector.broadcast %cst_29 : f32 to vector<16x16xf32>
    %56 = arith.maximumf %55, %54 : vector<16x16xf32>
    %57 = vector.broadcast %cst_30 : f32 to vector<16x16xf32>
    %58 = arith.minimumf %57, %56 : vector<16x16xf32>
    %c4 = arith.constant 4 : index
    %c0_31 = arith.constant 0 : index
    %59 = vector.load %arg5[%c4, %c0_31] : memref<8x64xf32, #tpu.memory_space<vmem>>, vector<1x16xf32>
    %60 = vector.broadcast %59 : vector<1x16xf32> to vector<16x16xf32>
    %61 = arith.mulf %58, %60 : vector<16x16xf32>
    %cst_32 = arith.constant dense<0.000000e+00> : vector<16xf32>
    %62 = vector.multi_reduction <add>, %61, %cst_32 [1] : vector<16x16xf32> to vector<16xf32>
    %63 = vector.shape_cast %62 : vector<16xf32> to vector<16x1xf32>
    %64 = vector.broadcast %52 : vector<1x1xf32> to vector<16x1xf32>
    %65 = arith.addf %63, %64 : vector<16x1xf32>
    %66 = tpu.iota {dimensions = array<i32: 0>} : vector<16x1xi32>
    %67 = arith.index_cast %arg0 : i32 to index
    %c0_33 = arith.constant 0 : index
    %68 = memref.load %arg1[%67, %c0_33] : memref<2x2xi32, #tpu.memory_space<smem>>
    %69 = arith.index_cast %arg0 : i32 to index
    %c1_34 = arith.constant 1 : index
    %70 = memref.load %arg1[%69, %c1_34] : memref<2x2xi32, #tpu.memory_space<smem>>
    %71 = vector.broadcast %70 : i32 to vector<16x1xi32>
    %72 = arith.cmpi slt, %66, %71 : vector<16x1xi32>
    %73 = vector.extract_strided_slice %5 {offsets = [0, 0], sizes = [16, 1], strides = [1, 1]} : vector<16x2xf32> to vector<16x1xf32>
    %74 = arith.addf %65, %73 : vector<16x1xf32>
    %cst_35 = arith.constant -1.000000e+30 : f32
    %75 = vector.broadcast %cst_35 : f32 to vector<16x1xf32>
    %76 = arith.select %72, %74, %75 : vector<16x1xi1>, vector<16x1xf32>
    %77 = vector.shape_cast %76 : vector<16x1xf32> to vector<1x16x1xf32>
    %cst_36 = arith.constant dense<0xFF800000> : vector<1xf32>
    %78 = vector.multi_reduction <maximumf>, %77, %cst_36 [1, 2] : vector<1x16x1xf32> to vector<1xf32>
    %79 = vector.shape_cast %78 : vector<1xf32> to vector<1x1x1xf32>
    %80 = vector.extract %79[0, 0, 0] : f32 from vector<1x1x1xf32>
    %81 = vector.broadcast %80 : f32 to vector<16x1xf32>
    %82 = arith.cmpf oeq, %76, %81 : vector<16x1xf32>
    %c16_i32 = arith.constant 16 : i32
    %83 = vector.broadcast %c16_i32 : i32 to vector<16x1xi32>
    %84 = arith.select %82, %66, %83 : vector<16x1xi1>, vector<16x1xi32>
    %85 = vector.shape_cast %84 : vector<16x1xi32> to vector<1x16x1xi32>
    %cst_37 = arith.constant dense<2147483647> : vector<1xi32>
    %86 = vector.multi_reduction <minsi>, %85, %cst_37 [1, 2] : vector<1x16x1xi32> to vector<1xi32>
    %87 = vector.shape_cast %86 : vector<1xi32> to vector<1x1x1xi32>
    %88 = vector.extract %87[0, 0, 0] : i32 from vector<1x1x1xi32>
    %89 = vector.broadcast %88 : i32 to vector<16x1xi32>
    %90 = arith.cmpi eq, %66, %89 : vector<16x1xi32>
    %91 = vector.extract_strided_slice %51 {offsets = [0, 40], sizes = [16, 24], strides = [1, 1]} : vector<16x64xf32> to vector<16x24xf32>
    %cst_38 = arith.constant 0.000000e+00 : f32
    %92 = vector.shape_cast %90 : vector<16x1xi1> to vector<16x1xi1>
    %93 = vector.broadcast %92 : vector<16x1xi1> to vector<16x24xi1>
    %94 = vector.broadcast %cst_38 : f32 to vector<16x24xf32>
    %95 = arith.select %93, %91, %94 : vector<16x24xi1>, vector<16x24xf32>
    %cst_39 = arith.constant dense<0.000000e+00> : vector<24xf32>
    %96 = vector.multi_reduction <add>, %95, %cst_39 [0] : vector<16x24xf32> to vector<24xf32>
    %97 = vector.shape_cast %96 : vector<24xf32> to vector<1x24xf32>
    %98 = vector.extract_strided_slice %51 {offsets = [0, 16], sizes = [16, 24], strides = [1, 1]} : vector<16x64xf32> to vector<16x24xf32>
    %99 = vector.broadcast %97 : vector<1x24xf32> to vector<16x24xf32>
    %100 = arith.addf %98, %99 : vector<16x24xf32>
    %cst_40 = arith.constant 0.000000e+00 : f32
    %cst_41 = arith.constant 6.000000e+00 : f32
    %101 = vector.broadcast %cst_40 : f32 to vector<16x24xf32>
    %102 = arith.maximumf %101, %100 : vector<16x24xf32>
    %103 = vector.broadcast %cst_41 : f32 to vector<16x24xf32>
    %104 = arith.minimumf %103, %102 : vector<16x24xf32>
    %c5 = arith.constant 5 : index
    %c0_42 = arith.constant 0 : index
    %105 = vector.load %arg5[%c5, %c0_42] : memref<8x64xf32, #tpu.memory_space<vmem>>, vector<1x24xf32>
    %106 = vector.broadcast %105 : vector<1x24xf32> to vector<16x24xf32>
    %107 = arith.mulf %104, %106 : vector<16x24xf32>
    %cst_43 = arith.constant dense<0.000000e+00> : vector<16xf32>
    %108 = vector.multi_reduction <add>, %107, %cst_43 [1] : vector<16x24xf32> to vector<16xf32>
    %109 = vector.shape_cast %108 : vector<16xf32> to vector<16x1xf32>
    %110 = vector.broadcast %53 : vector<1x1xf32> to vector<16x1xf32>
    %111 = arith.addf %109, %110 : vector<16x1xf32>
    %112 = vector.broadcast %68 : i32 to vector<16x1xi32>
    %113 = arith.cmpi slt, %66, %112 : vector<16x1xi32>
    %cst_44 = arith.constant dense<true> : vector<16x1xi1>
    %114 = arith.xori %90, %cst_44 : vector<16x1xi1>
    %115 = arith.andi %113, %114 : vector<16x1xi1>
    %116 = vector.extract_strided_slice %5 {offsets = [0, 1], sizes = [16, 1], strides = [1, 1]} : vector<16x2xf32> to vector<16x1xf32>
    %117 = arith.addf %111, %116 : vector<16x1xf32>
    %cst_45 = arith.constant -1.000000e+30 : f32
    %118 = vector.broadcast %cst_45 : f32 to vector<16x1xf32>
    %119 = arith.select %115, %117, %118 : vector<16x1xi1>, vector<16x1xf32>
    %120 = vector.shape_cast %119 : vector<16x1xf32> to vector<1x16x1xf32>
    %cst_46 = arith.constant dense<0xFF800000> : vector<1xf32>
    %121 = vector.multi_reduction <maximumf>, %120, %cst_46 [1, 2] : vector<1x16x1xf32> to vector<1xf32>
    %122 = vector.shape_cast %121 : vector<1xf32> to vector<1x1x1xf32>
    %123 = vector.extract %122[0, 0, 0] : f32 from vector<1x1x1xf32>
    %124 = vector.broadcast %123 : f32 to vector<16x1xf32>
    %125 = arith.cmpf oeq, %119, %124 : vector<16x1xf32>
    %c16_i32_47 = arith.constant 16 : i32
    %126 = vector.broadcast %c16_i32_47 : i32 to vector<16x1xi32>
    %127 = arith.select %125, %66, %126 : vector<16x1xi1>, vector<16x1xi32>
    %128 = vector.shape_cast %127 : vector<16x1xi32> to vector<1x16x1xi32>
    %cst_48 = arith.constant dense<2147483647> : vector<1xi32>
    %129 = vector.multi_reduction <minsi>, %128, %cst_48 [1, 2] : vector<1x16x1xi32> to vector<1xi32>
    %130 = vector.shape_cast %129 : vector<1xi32> to vector<1x1x1xi32>
    %131 = vector.extract %130[0, 0, 0] : i32 from vector<1x1x1xi32>
    %132 = tpu.concatenate %65, %111 in 1 : vector<16x1xf32>, vector<16x1xf32> -> vector<16x2xf32>
    %c0_49 = arith.constant 0 : index
    %c0_50 = arith.constant 0 : index
    %c0_51 = arith.constant 0 : index
    %133 = vector.load %arg6[%c0_49, %c0_50, %c0_51] : memref<1x16x2xf32, #tpu.memory_space<vmem>>, vector<1x16x2xf32>
    %134 = vector.shape_cast %133 : vector<1x16x2xf32> to vector<16x2xf32>
    %135 = vector.shape_cast %132 : vector<16x2xf32> to vector<1x16x2xf32>
    tpu.vector_store %arg6[%c0_49, %c0_50, %c0_51], %135 {strides = array<i32>} : memref<1x16x2xf32, #tpu.memory_space<vmem>>, vector<1x16x2xf32>,
    %136 = vector.broadcast %88 : i32 to vector<1x1xi32>
    %137 = vector.broadcast %131 : i32 to vector<1x1xi32>
    %138 = tpu.concatenate %136, %137 in 1 : vector<1x1xi32>, vector<1x1xi32> -> vector<1x2xi32>
    %c0_52 = arith.constant 0 : index
    %c0_53 = arith.constant 0 : index
    %c0_54 = arith.constant 0 : index
    %139 = vector.load %arg7[%c0_52, %c0_53, %c0_54] : memref<1x1x2xi32, #tpu.memory_space<vmem>>, vector<1x1x2xi32>
    %140 = vector.shape_cast %139 : vector<1x1x2xi32> to vector<1x2xi32>
    %141 = vector.shape_cast %138 : vector<1x2xi32> to vector<1x1x2xi32>
    tpu.vector_store %arg7[%c0_52, %c0_53, %c0_54], %141 {strides = array<i32>} : memref<1x1x2xi32, #tpu.memory_space<vmem>>, vector<1x1x2xi32>,
    return
  }
  func.func @transform_0(%arg0: i32, %arg1: memref<2x2xi32, #tpu.memory_space<smem>>) -> (i32, i32, i32) {
    %c0_i32 = arith.constant 0 : i32
    %c0_i32_0 = arith.constant 0 : i32
    %c0_i32_1 = arith.constant 0 : i32
    return %arg0, %c0_i32, %c0_i32_0 : i32, i32, i32
  }
  func.func @transform_1(%arg0: i32, %arg1: memref<2x2xi32, #tpu.memory_space<smem>>) -> (i32, i32, i32) {
    %c0_i32 = arith.constant 0 : i32
    %c0_i32_0 = arith.constant 0 : i32
    %c0_i32_1 = arith.constant 0 : i32
    return %arg0, %c0_i32, %c0_i32_0 : i32, i32, i32
  }
  func.func @transform_2(%arg0: i32, %arg1: memref<2x2xi32, #tpu.memory_space<smem>>) -> (i32, i32) {
    %c0_i32 = arith.constant 0 : i32
    %c0_i32_0 = arith.constant 0 : i32
    %c0_i32_1 = arith.constant 0 : i32
    return %c0_i32, %c0_i32_0 : i32, i32
  }
  func.func @transform_3(%arg0: i32, %arg1: memref<2x2xi32, #tpu.memory_space<smem>>) -> (i32, i32) {
    %c0_i32 = arith.constant 0 : i32
    %c0_i32_0 = arith.constant 0 : i32
    %c0_i32_1 = arith.constant 0 : i32
    return %c0_i32, %c0_i32_0 : i32, i32
  }
  func.func @transform_4(%arg0: i32, %arg1: memref<2x2xi32, #tpu.memory_space<smem>>) -> (i32, i32, i32) {
    %c0_i32 = arith.constant 0 : i32
    %c0_i32_0 = arith.constant 0 : i32
    %c0_i32_1 = arith.constant 0 : i32
    return %arg0, %c0_i32, %c0_i32_0 : i32, i32, i32
  }
  func.func @transform_5(%arg0: i32, %arg1: memref<2x2xi32, #tpu.memory_space<smem>>) -> (i32, i32, i32) {
    %c0_i32 = arith.constant 0 : i32
    %c0_i32_0 = arith.constant 0 : i32
    %c0_i32_1 = arith.constant 0 : i32
    return %arg0, %c0_i32, %c0_i32_0 : i32, i32, i32
  }
}

</mosaic_0001>

<bundles_post_ra>
// kernel: policy_nn_forward.1
= control target key start
LH: loop header
LB: loop body
LE: loop exit
PB: predicated region body
PF: predicated region fallthrough
CT: control target
= control target key end

     0   :  { %s919_s24 = smov [#allocation3]   ;;  %s1184_s0 = inlined_call_operand.vmem [shape: s32[2,2], index: 0, kind: input, shape index: {}]   ;;  %s1185_s1 = inlined_call_operand.vmem [shape: f32[2,16,16], index: 1, kind: input, shape index: {}]   ;;  %s1186_s2 = inlined_call_operand.vmem [shape: f32[2,16,16], index: 2, kind: input, shape index: {}]   ;;  %s1187_s3 = inlined_call_operand.vmem [shape: f32[88,64], index: 3, kind: input, shape index: {}]   ;;  %s1188_s4 = inlined_call_operand.vmem [shape: f32[8,64], index: 4, kind: input, shape index: {}]   ;;  %s1189_s5 = inlined_call_operand.vmem [shape: f32[2,16,2], index: 5, kind: output, shape index: {0}]   ;;  %s1190_s6 = inlined_call_operand.vmem [shape: s32[2,1,2], index: 6, kind: output, shape index: {1}]  }
   0x1   :  { %s13_s23 = sshll.u32 %s1184_s0, 4  ;;  %s14_s23 = int_to_ptr.vmem [resolvable:$true] %s13_s23 }
   0x2   :  { %16 = dma.vmem_to_smem %s14_s23, 32, %s919_s24, [#allocation2] }
   0x3   :  { %913 = dma.done.wait [#allocation2], 32 }
   0x4   :  { %914 = vsyncadd [#allocation2], 4294967264 }
   0x5   :  { %19 = sfence }
   0x6   :  { %s964_s25 = smov 0  }
   0x7 LB: > { %s970_s26 = sadd.s32 4294967295, %s917_s25   ;;  %p833_p0 = scmp.ge.s32.totalorder %s917_s25, 1  ;;  %s917_s25 = sphi %s964_s25, %s25_s25  }
   0x8   : > { %p209_p1 = scmp.lt.s32.totalorder %s917_s25, 3 }
   0xa   : > { %p210_p2 = pnand %p833_p0, %p209_p1 }
   0xb   : > { %p245_p3 = scmp.lt.s32.totalorder (!%p210_p2), %s970_s26, 1  ;;  %s921_s17 = smov (!%p210_p2), 118  }
   0xc   : > { %213 = sbr.rel (%p210_p2) target bundleno = 2614 (0xa36), region = 36  ;;  %s854_s22 = sshll.u32 (!%p210_p2), %s970_s26, 7 }
   0xd   : > { %s555_s23 = sadd.s32 (!%p210_p2), 1, %s854_s22  ;;  %s922_s8 = smov (!%p210_p2), 104  }
   0xe   : > { %s556_s24 = sld [smem:[#allocation3 + %s555_s23]] (!%p210_p2)  ;;  %s923_s11 = smov (!%p210_p2), 16  }
   0xf   : > { %s924_s12 = smov (!%p210_p2), 112   ;;  %s554_s16 = sld [smem:[#allocation3 + %s854_s22]] (!%p210_p2) }
  0x11   : > { %v920_v0 = vmov 9   ;;  %s976_s0 = scalar_select %p245_p3, %s970_s26, 1  ;;  %vm303_vm8 = vcmask 130048   ;;  %v336_v25 = vld [vmem:[%s1187_s3 + $0x8] sm:$0xff]  ;;  %v335_v26 = vld [vmem:[%s1187_s3] sm:$0xff]  ;;  %v398_v40 = vld [vmem:[%s1187_s3 + $0x18] sm:$0xff] }
  0x12   : > { %885 = vset.pattern.permute.xlu0 %v920_v0  ;;  %359 = vmatpush.msra.mxu1 %v336_v25  ;;  %v886_v32 = vld [vmem:[%s1188_s4] ss:$0 sm:$0xff]  ;;  %v397_v41 = vld [vmem:[%s1187_s3 + $0x10] sm:$0xff]  ;;  %v460_v47 = vld [vmem:[%s1187_s3 + $0x28] sm:$0xff]  ;;  %vm464_vm9 = vcmask 195584   ;;  %vm502_vm10 = vcmask 261120  }
  0x13   : > { %s979_s27 = sshll.u32 %s976_s0, 4  ;;  %v461_v46 = vld [vmem:[%s1187_s3 + $0x30] sm:$0xff]  ;;  %v887_v49 = vld [vmem:[%s1188_s4 + $0x1] ss:$0 sm:$0xff]  ;;  %v498_v59 = vld [vmem:[%s1187_s3 + $0x48] sm:$0xff]  ;;  %vm572_vm13 = vcmask 7168   ;;  %s262_s18 = scalar_lea.vmem %s1190_s6, %s976_s0 }
  0x14   : > { %s254_s30 = scalar_lea.vmem %s1186_s2, %s979_s27  ;;  %s249_s9 = scalar_lea.vmem %s1185_s1, %s979_s27  ;;  %360 = vmatpush.msra.mxu1 %v335_v26  ;;  %v459_v57 = vld [vmem:[%s1187_s3 + $0x20] sm:$0xff]  ;;  %v499_v58 = vld [vmem:[%s1187_s3 + $0x50] sm:$0xff]  ;;  %v550_v26 = vlaneseq }
  0x15   : > { %v985_v1 = vld [vmem:[%s254_s30 + $0x8] sm:$0xff]  ;;  %v987_v2 = vld [vmem:[%s254_s30] sm:$0xff]  ;;  %s259_s15 = scalar_lea.vmem %s1189_s5, %s979_s27 }
  0x16   : > { %893 = vrsqrt.f32 %v985_v1  ;;  %vm285_vm0 = vweird.f32 %v985_v1  ;;  %vm268_vm3 = vcmp.gt.f32.partialorder %v985_v1, 0.0  ;;  %vm275_vm4 = vweird.f32 %v987_v2  ;;  %v263_v23 = vld [vmem:[%s249_s9] sm:$0xff]  ;;  %v264_v24 = vld [vmem:[%s249_s9 + $0x8] sm:$0xff]  ;;  %484 = vmatpush.msrb.mxu1 %v461_v46  ;;  %562 = vrot.lane.b32.xlu2 %v987_v2, %s921_s17 }
  0x17   : > { %895 = vrsqrt.f32 %v987_v2  ;;  %vm267_vm7 = vcmp.gt.f32.partialorder %v987_v2, 0.0  ;;  %v497_v0 = vld [vmem:[%s1187_s3 + $0x40] sm:$0xff] }
  0x18   : > { %485 = vmatpush.msrb.mxu1 %v460_v47 }
  0x1a   : > { %486 = vmatpush.msrb.mxu1 %v459_v57 }
  0x1c   : > { %v894_v3 = vpop.eup %893 }
  0x1d   : > { %v896_v4 = vpop.eup %895  ;;  %v280_v5 = vmul.f32 %v894_v3, %v985_v1  ;;  %vm286_vm1 = vweird.f32 %v894_v3 }
  0x1e   : > { %v270_v6 = vmul.f32 %v896_v4, %v987_v2  ;;  %vm287_vm2 = vmor %vm285_vm0, %vm286_vm1  ;;  %vm276_vm5 = vweird.f32 %v896_v4  ;;  %564 = vrot.lane.b32.xlu2 %v985_v1, %s921_s17 }
  0x1f   : > { %v281_v7 = vmul.f32 %v894_v3, %v280_v5  ;;  %vm277_vm6 = vmor %vm275_vm4, %vm276_vm5  ;;  %vm627_vm5 = vcmask 523584  }
  0x20   : > { %v271_v8 = vmul.f32 %v896_v4, %v270_v6 }
  0x21   : > { %v282_v9 = vmul.f32 0.5, %v281_v7 }
  0x22   : > { %v272_v10 = vmul.f32 0.5, %v271_v8 }
  0x23   : > { %v283_v11 = vsub.f32 1.5, %v282_v9 }
  0x24   : > { %v273_v12 = vsub.f32 1.5, %v272_v10 }
  0x25   : > { %v284_v13 = vmul.f32 %v894_v3, %v283_v11  ;;  %v889_v11 = vld [vmem:[%s1188_s4 + $0x3] ss:$0 sm:$0xff] }
  0x26   : > { %v274_v15 = vmul.f32 %v896_v4, %v273_v12 }
  0x27   : > { %v288_v14 = vsel %vm287_vm2, %v894_v3, %v284_v13  ;;  %v496_v3 = vld [vmem:[%s1187_s3 + $0x38] sm:$0xff] }
  0x28   : > { %v290_v16 = vsel %vm268_vm3, %v288_v14, 0.0  ;;  %v278_v17 = vsel %vm277_vm6, %v896_v4, %v274_v15  ;;  %v888_v4 = vld [vmem:[%s1188_s4 + $0x2] ss:$0 sm:$0xff]  ;;  %v890_v15 = vld [vmem:[%s1188_s4 + $0x4] ss:$0 sm:$0xff] }
  0x29   : > { %298 = vperm.xlu0 %885, %v290_v16   ;;  %v289_v18 = vsel %vm267_vm7, %v278_v17, 0.0 }
  0x31   : > { %293 = vperm.xlu0 %885, %v289_v18  }
  0x9b   : > { %v997_v19 = vpop.permute.xlu0 %298 }
  0x9c   : > { %v302_v20 = vmul.f32 %v997_v19, %v985_v1 }
  0x9e   : > { %324 = vmatpush.msra.mxu0 %v302_v20  ;;  %860 = vmatpush.msra.mxu3 %v302_v20 }
  0xa3   : > { %v1005_v21 = vpop.permute.xlu0 %293 }
  0xa4   : > { %v301_v22 = vmul.f32 %v1005_v21, %v987_v2 }
  0xa6   : > { %325 = vmatpush.msra.mxu0 %v301_v22  ;;  %861 = vmatpush.msra.mxu3 %v301_v22 }
  0xa7   : > { %840 = vmatmul.msk.f32.vlgmr.msra.gmra.mxu0 %vm303_vm8, %v263_v23  ;;  %841 = vmatmul.msk.f32.vlgmr.msra.gmra.mxu3 %vm303_vm8, %v264_v24 }
  0xa8   : > { %421 = vmatpush.msrb.mxu3 %v398_v40 }
  0xaa   : > { %422 = vmatpush.msrb.mxu3 %v397_v41 }
 0x124   : > { %v327_v27 = vpop.f32.mrf.mxu0 }
 0x125   : > { %v333_v28 = vmul.f32 %v327_v27, %v1005_v21 }
 0x127   : > { %842 = vmatmul.msk.f32.vlgmr.msra.gmra.mxu1 %vm303_vm8, %v333_v28  ;;  %v1102_v28 = vshrl.u32 %v550_v26, 7 }
 0x12a   : > { %v330_v29 = vpop.f32.mrf.mxu3 }
 0x12b   : > { %v334_v30 = vmul.f32 %v330_v29, %v997_v19  ;;  %v557_v29 = vstv %s556_s24 }
 0x12c   : > { %vm558_vm11 = vcmp.lt.s32.totalorder %v1102_v28, %v557_v29 }
 0x12f   : > { %843 = vmatmul.msk.f32.gmra.mxu1 %vm303_vm8, %v334_v30  ;;  %v1105_v30 = vadd.s32 8, %v1102_v28 }
 0x131   : > { %vm559_vm12 = vcmp.lt.s32.totalorder %v1105_v30, %v557_v29 }
 0x1a4   : > { %v362_v31 = vpop.f32.mrf.mxu1 }
 0x1a5   : > { %v363_v33 = vadd.f32 %v886_v32, %v362_v31 }
 0x1a7   : > { %v368_v36 = vmax.f32 %v363_v33, 0.0 }
 0x1a9   : > { %v370_v39 = vmul.f32 %v368_v36, %v1005_v21 }
 0x1ac   : > { %v365_v34 = vpop.f32.mrf.mxu1 }
 0x1ad   : > { %v366_v35 = vadd.f32 %v886_v32, %v365_v34 }
 0x1af   : > { %v369_v37 = vmax.f32 %v366_v35, 0.0 }
 0x1b1   : > { %v371_v38 = vmul.f32 %v369_v37, %v997_v19 }
 0x1b3   : > { %386 = vmatpush.msra.mxu2 %v371_v38 }
 0x1b5   : > { %387 = vmatpush.msra.mxu2 %v370_v39 }
 0x1b6   : > { %844 = vmatmul.msk.f32.vlgmr.msra.gmra.mxu2 %vm303_vm8, %v263_v23 }
 0x1b7   : > { %521 = vmatpush.msrb.mxu2 %v499_v58 }
 0x1b9   : > { %522 = vmatpush.msrb.mxu2 %v498_v59 }
 0x1bb   : > { %523 = vmatpush.msrb.mxu2 %v497_v0 }
 0x1bd   : > { %524 = vmatpush.msrb.mxu2 %v496_v3 }
 0x1be   : > { %845 = vmatmul.msk.f32.gmra.mxu2 %vm303_vm8, %v264_v24 }
 0x239   : > { %v389_v42 = vpop.f32.mrf.mxu2 }
 0x23a   : > { %v395_v43 = vmul.f32 %v389_v42, %v1005_v21 }
 0x23c   : > { %846 = vmatmul.msk.f32.vlgmr.msrb.gmra.mxu3 %vm303_vm8, %v395_v43 }
 0x241   : > { %v392_v44 = vpop.f32.mrf.mxu2 }
 0x242   : > { %v396_v45 = vmul.f32 %v392_v44, %v997_v19 }
 0x244   : > { %847 = vmatmul.msk.f32.gmra.mxu3 %vm303_vm8, %v396_v45 }
 0x2bf   : > { %v424_v48 = vpop.f32.mrf.mxu3 }
 0x2c0   : > { %v425_v50 = vadd.f32 %v887_v49, %v424_v48 }
 0x2c2   : > { %v430_v53 = vmax.f32 %v425_v50, 0.0 }
 0x2c4   : > { %v432_v56 = vmul.f32 %v430_v53, %v1005_v21 }
 0x2c7   : > { %v427_v51 = vpop.f32.mrf.mxu3 }
 0x2c8   : > { %v428_v52 = vadd.f32 %v887_v49, %v427_v51 }
 0x2ca   : > { %v431_v54 = vmax.f32 %v428_v52, 0.0 }
 0x2cc   : > { %v433_v55 = vmul.f32 %v431_v54, %v997_v19 }
 0x2ce   : > { %448 = vmatpush.msrb.mxu0 %v433_v55 }
 0x2d0   : > { %449 = vmatpush.msrb.mxu0 %v432_v56 }
 0x2d1   : > { %848 = vmatmul.msk.f32.vlgmr.msrb.gmra.mxu0 %vm303_vm8, %v263_v23  ;;  %v1092_v23 = vpop.permute.xlu2 %562 }
 0x2d9   : > { %849 = vmatmul.msk.f32.gmra.mxu0 %vm303_vm8, %v264_v24  ;;  %v1097_v24 = vld [vmem:[%s1188_s4 + $0x6] ss:$0 sm:$0xff]  ;;  %v1109_v33 = vpop.permute.xlu2 %564 }
 0x34e   : > { %v451_v60 = vpop.f32.mrf.mxu0 }
 0x34f   : > { %v457_v61 = vmul.f32 %v451_v60, %v1005_v21 }
 0x351   : > { %850 = vmatmul.msk.f32.vlgmr.msrb.gmra.mxu1 %vm464_vm9, %v457_v61 }
 0x356   : > { %v454_v62 = vpop.f32.mrf.mxu0 }
 0x357   : > { %v458_v63 = vmul.f32 %v454_v62, %v997_v19 }
 0x359   : > { %851 = vmatmul.msk.f32.gmra.mxu1 %vm464_vm9, %v458_v63 }
 0x3ce   : > { %v488_v5 = vpop.f32.mrf.mxu1 }
 0x3cf   : > { %v489_v6 = vadd.f32 %v888_v4, %v488_v5 }
 0x3d1   : > { %v494_v7 = vmax.f32 %v489_v6, 0.0 }
 0x3d3   : > { %852 = vmatmul.msk.f32.vlgmr.msrb.gmra.mxu2 %vm502_vm10, %v494_v7 }
 0x3d6   : > { %v491_v8 = vpop.f32.mrf.mxu1 }
 0x3d7   : > { %v492_v9 = vadd.f32 %v888_v4, %v491_v8 }
 0x3d9   : > { %v495_v10 = vmax.f32 %v492_v9, 0.0 }
 0x3db   : > { %853 = vmatmul.msk.f32.gmra.mxu2 %vm502_vm10, %v495_v10  ;;  %vm925_vm10 = vmmov 1  }
 0x456   : > { %v526_v12 = vpop.f32.mrf.mxu2 }
 0x457   : > { %v1078_v13 = vadd.f32 %v889_v11, %v526_v12 }
 0x459   : > { %v533_v14 = vmax.f32 %v1078_v13, 0.0 }
 0x45b   : > { %v535_v16 = vmin.f32 %v533_v14, 6.0 }
 0x45d   : > { %v539_v17 = vmul.f32 %v890_v15, %v535_v16 }
 0x45e   : > { %v529_v2 = vpop.f32.mrf.mxu2 }
 0x45f   : > { %v1084_v18 = vadd.f32 %v889_v11, %v529_v2  ;;  %v541_v1 = vsel %vm303_vm8, %v539_v17, 0.0 }
 0x460   : > { %542 = vadd.xlane.f32.xlu1 %v541_v1 }
 0x461   : > { %v534_v19 = vmax.f32 %v1084_v18, 0.0 }
 0x463   : > { %v536_v20 = vmin.f32 %v534_v19, 6.0 }
 0x465   : > { %v540_v21 = vmul.f32 %v890_v15, %v536_v20 }
 0x467   : > { %v544_v22 = vsel %vm303_vm8, %v540_v21, 0.0  ;;  %v892_v21 = vld [vmem:[%s1188_s4 + $0x5] ss:$0 sm:$0xff]  ;;  %vm730_vm8 = vcmask 15360  }
 0x468   : > { %545 = vadd.xlane.f32.xlu1 %v544_v22 }
 0x4d3   : > { %v543_v25 = vpop.xlane.xlu1 %542 }
 0x4d4   : > { %v1100_v27 = vadd.f32 %v1097_v24, %v543_v25 }
 0x4d6   : > { %v568_v31 = vadd.f32 %v1092_v23, %v1100_v27 }
 0x4d8   : > { %v570_v36 = vsel %vm558_vm11, %v568_v31, -1e+30 }
 0x4d9   : > { %v573_v38 = vsel %vm572_vm13, %v570_v36, -inf }
 0x4db   : > { %v546_v32 = vpop.xlane.xlu1 %545 }
 0x4dc   : > { %v1113_v34 = vadd.f32 %v1097_v24, %v546_v32 }
 0x4de   : > { %v569_v35 = vadd.f32 %v1109_v33, %v1113_v34 }
 0x4e0   : > { %v571_v37 = vsel %vm559_vm12, %v569_v35, -1e+30 }
 0x4e1   : > { %v574_v39 = vsel %vm572_vm13, %v571_v37, -inf }
 0x4e2   : > { %v575_v40 = vmax.f32 %v573_v38, %v574_v39 }
 0x4e4   : > { %576 = vmax.xlane.f32.xlu0 %v575_v40 }
 0x557   : > { %v577_v41 = vpop.xlane.xlu0 %576 }
 0x558   : > { %v578_v42 = vrot.slane %v577_v41, 4 }
 0x55a   : > { %v579_v43 = vmax.f32 %v577_v41, %v578_v42 }
 0x55c   : > { %v580_v44 = vrot.slane %v579_v43, 2 }
 0x55e   : > { %v581_v45 = vmax.f32 %v579_v43, %v580_v44  ;;  %v671_v44 = vstv %s554_s16 }
 0x55f   : > { %vm673_vm11 = vcmp.lt.s32.totalorder %v1105_v30, %v671_v44 }
 0x560   : > { %v582_v46 = vrot.slane %v581_v45, 1 }
 0x562   : > { %v583_v47 = vmax.f32 %v581_v45, %v582_v46 }
 0x564   : > { %862 = vpush %v583_v47 }
 0x595   : > { %s863_s30 = spop %862 }
 0x596   : > { %v585_v48 = vstv %s863_s30 }
 0x597   : > { %vm586_vm14 = vcmp.eq.f32.partialorder %v570_v36, %v585_v48  ;;  %vm587_vm15 = vcmp.eq.f32.partialorder %v571_v37, %v585_v48 }
 0x598   : > { %v588_v49 = vsel %vm586_vm14, %v1102_v28, 16  ;;  %v589_v50 = vsel %vm587_vm15, %v1105_v30, 16  ;;  %vm672_vm14 = vcmp.lt.s32.totalorder %v1102_v28, %v671_v44 }
 0x599   : > { %v590_v51 = vsel %vm572_vm13, %v588_v49, 2147483647  ;;  %v591_v52 = vsel %vm572_vm13, %v589_v50, 2147483647 }
 0x59a   : > { %vm592_vm0 = vcmp.lt.s32.totalorder %v590_v51, %v591_v52 }
 0x59b   : > { %v593_v53 = vsel %vm592_vm0, %v590_v51, %v591_v52  ;;  %vm682_vm0 = vcmask 15368  }
 0x59c   : > { %v595_v54 = vshra.s32 %v593_v53, 16  ;;  %v594_v56 = vand.u32 65535, %v593_v53 }
 0x59e   : > { %v597_v55 = vcvt.s32.f32 %v595_v54  ;;  %v596_v58 = vcvt.s32.f32 %v594_v56 }
 0x5a0   : > { %598 = vmin.xlane.f32.xlu1 %v597_v55 }
 0x613   : > { %v599_v57 = vpop.xlane.xlu1 %598 }
 0x614   : > { %vm600_vm1 = vcmp.eq.f32.partialorder %v597_v55, %v599_v57  ;;  %v605_v60 = vcvt.f32.s32 %v599_v57 }
 0x615   : > { %v601_v59 = vsel %vm600_vm1, %v596_v58, inf }
 0x616   : > { %602 = vmin.xlane.f32.xlu2 %v601_v59  ;;  %v606_v62 = vshll.u32 %v605_v60, 16 }
 0x689   : > { %v603_v61 = vpop.xlane.xlu2 %602 }
 0x68a   : > { %v604_v63 = vcvt.f32.s32 %v603_v61 }
 0x68c   : > { %v607_v0 = vadd.s32 %v606_v62, %v604_v63 }
 0x68e   : > { %v608_v3 = vrot.slane %v607_v0, 4 }
 0x690   : > { %vm609_vm2 = vcmp.lt.s32.totalorder %v607_v0, %v608_v3 }
 0x691   : > { %v610_v4 = vsel %vm609_vm2, %v607_v0, %v608_v3 }
 0x692   : > { %v611_v5 = vrot.slane %v610_v4, 2 }
 0x694   : > { %vm612_vm3 = vcmp.lt.s32.totalorder %v610_v4, %v611_v5 }
 0x695   : > { %v613_v6 = vsel %vm612_vm3, %v610_v4, %v611_v5 }
 0x696   : > { %v614_v7 = vrot.slane %v613_v6, 1 }
 0x698   : > { %vm615_vm4 = vcmp.lt.s32.totalorder %v613_v6, %v614_v7 }
 0x699   : > { %v616_v8 = vsel %vm615_vm4, %v613_v6, %v614_v7 }
 0x69a   : > { %864 = vpush %v616_v8 }
 0x6cb   : > { %s865_s7 = spop %864 }
 0x6cc   : > { %v1124_v9 = vstv %s865_s7 }
 0x6cd   : > { %vm619_vm6 = vcmp.eq.s32.totalorder %v1102_v28, %v1124_v9  ;;  %vm620_vm7 = vcmp.eq.s32.totalorder %v1105_v30, %v1124_v9 }
 0x6ce   : > { %v625_v10 = vsel %vm619_vm6, %v1078_v13, 0.0  ;;  %v626_v11 = vsel %vm620_vm7, %v1084_v18, 0.0  ;;  %vm674_vm12 = vmxor %vm619_vm6, %vm925_vm10 }
 0x6cf   : > { %v628_v12 = vsel %vm627_vm5, %v625_v10, 0.0  ;;  %v629_v14 = vsel %vm627_vm5, %v626_v11, 0.0  ;;  %vm676_vm1 = vmand %vm672_vm14, %vm674_vm12 }
 0x6d0   : > { %v630_v15 = vadd.f32 %v629_v14, %v628_v12 }
 0x6d2   : > { %v631_v16 = vrot.slane %v630_v15, 4 }
 0x6d4   : > { %v632_v17 = vadd.f32 %v631_v16, %v630_v15 }
 0x6d6   : > { %v633_v2 = vrot.slane %v632_v17, 2 }
 0x6d8   : > { %v634_v1 = vadd.f32 %v633_v2, %v632_v17 }
 0x6da   : > { %v635_v19 = vrot.slane %v634_v1, 1 }
 0x6dc   : > { %v636_v20 = vadd.f32 %v635_v19, %v634_v1 }
 0x6de   : > { %638 = vrot.lane.b32.xlu1 %v636_v20, %s922_s8 }
 0x6e6   : > { %650 = vrot.lane.b32.xlu1 %v892_v21, %s923_s11 }
 0x750   : > { %v639_v22 = vpop.permute.xlu1 %638 }
 0x751   : > { %v641_v25 = vadd.f32 %v639_v22, %v1078_v13  ;;  %v642_v26 = vadd.f32 %v639_v22, %v1084_v18 }
 0x753   : > { %v643_v29 = vmax.f32 %v641_v25, 0.0  ;;  %v644_v31 = vmax.f32 %v642_v26, 0.0 }
 0x755   : > { %v645_v32 = vmin.f32 %v643_v29, 6.0  ;;  %v646_v35 = vmin.f32 %v644_v31, 6.0 }
 0x758   : > { %v651_v36 = vpop.permute.xlu1 %650 }
 0x759   : > { %v653_v37 = vmul.f32 %v651_v36, %v645_v32  ;;  %v654_v38 = vmul.f32 %v651_v36, %v646_v35 }
 0x75b   : > { %659 = vrot.lane.b32.xlu2 %v654_v38, %s924_s12  ;;  %657 = vrot.lane.b32.xlu1 %v653_v37, %s924_s12 }
 0x7b5   : > { %v660_v39 = vpop.permute.xlu2 %659 }
 0x7b6   : > { %v666_v40 = vsel %vm464_vm9, %v660_v39, 0.0 }
 0x7b7   : > { %667 = vadd.xlane.f32.xlu1 %v666_v40 }
 0x7cd   : > { %v658_v41 = vpop.permute.xlu1 %657 }
 0x7ce   : > { %v663_v13 = vsel %vm464_vm9, %v658_v41, 0.0  ;;  %vm675_vm9 = vmxor %vm620_vm7, %vm925_vm10  ;;  %vm735_vm10 = vcmask 8192  }
 0x7cf   : > { %664 = vadd.xlane.f32.xlu0 %v663_v13  ;;  %vm677_vm15 = vmand %vm673_vm11, %vm675_vm9 }
 0x82a   : > { %v668_v18 = vpop.xlane.xlu1 %667 }
 0x82b   : > { %v670_v42 = vadd.f32 %v1097_v24, %v668_v18 }
 0x82d   : > { %v729_v43 = vsel %vm572_vm13, %v1113_v34, %v670_v42  ;;  %v679_v45 = vadd.f32 %v670_v42, %v1109_v33 }
 0x82e   : > { %732 = vst.msk [vmem:[%s259_s15 + $0x8] sm:$0xff] %vm730_vm8, %v729_v43 }
 0x82f   : > { %v681_v49 = vsel %vm677_vm15, %v679_v45, -1e+30 }
 0x830   : > { %v684_v51 = vsel %vm682_vm0, %v681_v49, -inf }
 0x842   : > { %v665_v46 = vpop.xlane.xlu0 %664 }
 0x843   : > { %v669_v34 = vadd.f32 %v1097_v24, %v665_v46 }
 0x845   : > { %v678_v47 = vadd.f32 %v669_v34, %v1092_v23  ;;  %v728_v48 = vsel %vm572_vm13, %v1100_v27, %v669_v34 }
 0x846   : > { %731 = vst.msk [vmem:[%s259_s15] sm:$0xff] %vm730_vm8, %v728_v48 }
 0x847   : > { %v680_v33 = vsel %vm676_vm1, %v678_v47, -1e+30 }
 0x848   : > { %v683_v50 = vsel %vm682_vm0, %v680_v33, -inf }
 0x849   : > { %v685_v52 = vmax.f32 %v683_v50, %v684_v51 }
 0x84b   : > { %686 = vmax.xlane.f32.xlu0 %v685_v52 }
 0x8be   : > { %v687_v24 = vpop.xlane.xlu0 %686 }
 0x8bf   : > { %v688_v53 = vrot.slane %v687_v24, 4 }
 0x8c1   : > { %v689_v54 = vmax.f32 %v687_v24, %v688_v53 }
 0x8c3   : > { %v690_v55 = vrot.slane %v689_v54, 2 }
 0x8c5   : > { %v691_v23 = vmax.f32 %v689_v54, %v690_v55 }
 0x8c7   : > { %v692_v56 = vrot.slane %v691_v23, 1 }
 0x8c9   : > { %v693_v57 = vmax.f32 %v691_v23, %v692_v56 }
 0x8cb   : > { %866 = vpush %v693_v57 }
 0x8fc   : > { %s867_s26 = spop %866 }
 0x8fd   : > { %v695_v27 = vstv %s867_s26 }
 0x8fe   : > { %vm696_vm2 = vcmp.eq.f32.partialorder %v680_v33, %v695_v27  ;;  %vm697_vm3 = vcmp.eq.f32.partialorder %v681_v49, %v695_v27 }
 0x8ff   : > { %v698_v58 = vsel %vm696_vm2, %v1102_v28, 16  ;;  %v699_v59 = vsel %vm697_vm3, %v1105_v30, 16 }
 0x900   : > { %v700_v60 = vsel %vm682_vm0, %v698_v58, 2147483647  ;;  %v701_v61 = vsel %vm682_vm0, %v699_v59, 2147483647 }
 0x901   : > { %vm702_vm4 = vcmp.lt.s32.totalorder %v700_v60, %v701_v61 }
 0x902   : > { %v703_v62 = vsel %vm702_vm4, %v700_v60, %v701_v61 }
 0x903   : > { %v705_v63 = vshra.s32 %v703_v62, 16  ;;  %v704_v3 = vand.u32 65535, %v703_v62 }
 0x905   : > { %v707_v0 = vcvt.s32.f32 %v705_v63  ;;  %v706_v5 = vcvt.s32.f32 %v704_v3 }
 0x907   : > { %708 = vmin.xlane.f32.xlu0 %v707_v0 }
 0x97a   : > { %v709_v4 = vpop.xlane.xlu0 %708 }
 0x97b   : > { %vm710_vm5 = vcmp.eq.f32.partialorder %v707_v0, %v709_v4  ;;  %v715_v7 = vcvt.f32.s32 %v709_v4 }
 0x97c   : > { %v711_v6 = vsel %vm710_vm5, %v706_v5, inf }
 0x97d   : > { %712 = vmin.xlane.f32.xlu2 %v711_v6  ;;  %v716_v8 = vshll.u32 %v715_v7, 16 }
 0x9f0   : > { %v713_v28 = vpop.xlane.xlu2 %712 }
 0x9f1   : > { %v714_v30 = vcvt.f32.s32 %v713_v28 }
 0x9f3   : > { %v717_v10 = vadd.s32 %v716_v8, %v714_v30 }
 0x9f5   : > { %v718_v11 = vrot.slane %v717_v10, 4 }
 0x9f7   : > { %vm719_vm6 = vcmp.lt.s32.totalorder %v717_v10, %v718_v11 }
 0x9f8   : > { %v720_v12 = vsel %vm719_vm6, %v717_v10, %v718_v11 }
 0x9f9   : > { %v721_v14 = vrot.slane %v720_v12, 2 }
 0x9fb   : > { %vm722_vm7 = vcmp.lt.s32.totalorder %v720_v12, %v721_v14 }
 0x9fc   : > { %v723_v15 = vsel %vm722_vm7, %v720_v12, %v721_v14 }
 0x9fd   : > { %v724_v16 = vrot.slane %v723_v15, 1 }
 0x9ff   : > { %vm725_vm8 = vcmp.lt.s32.totalorder %v723_v15, %v724_v16 }
 0xa00   : > { %v726_v17 = vsel %vm725_vm8, %v723_v15, %v724_v16 }
 0xa01   : > { %868 = vpush %v726_v17 }
 0xa32   : > { %s869_s19 = spop %868 }
 0xa33   : > { %v733_v2 = vstv %s869_s19 }
 0xa34   : > { %v734_v1 = vsel %vm572_vm13, %v1124_v9, %v733_v2 }
 0xa35   : > { %736 = vst.msk [vmem:[%s262_s18] sm:$0x1] %vm735_vm10, %v734_v1 }
 0xa36 PF: > { %s25_s25 = sadd.s32 1, %s917_s25  }
 0xa37   : > { %p22_p4 = scmp.ge.s32.totalorder %s25_s25, 4  }
 0xa39   :  { %24 = sbr.rel (!%p22_p4) target bundleno = 7 (0x7), region = 81 }

</bundles_post_ra>
